<compile_context>
chip_gen: v7x
topology: tpu7x:2x2x1
jax: 0.10.0
libtpu: 0.0.40
codegen_flags: <defaults>
</compile_context>

<pallas_src>
import jax
import jax.numpy as jnp
from jax.experimental import pallas as pl
from jax.experimental.pallas import tpu as pltpu

_EPS = 1e-8
_LANES = 128
_TILE_TARGET_BYTES = 2 * 1024 * 1024   # ~85%+ of HBM roofline per measured data
_TILE_FLOOR_BYTES = 512 * 1024         # never go below this just to add grid steps


def _round_up(v, m):
    return ((v + m - 1) // m) * m


def _round_down(v, m):
    return (v // m) * m


def _sublane_gran(itemsize):
    # sub-32-bit dtypes pack along sublanes: bf16 -> 16 rows/vreg, int8/fp8 -> 32
    if itemsize >= 4:
        return 8
    if itemsize == 2:
        return 16
    return 32


def _tpu_budgets():
    """(vmem_capacity_bytes, tensorcores, vmem_limit_bytes) with safe fallbacks."""
    vmem_cap = 64 * 1024 * 1024   # conservative default = v7x (64 MiB / TC)
    cores = 2                     # assume megacore for step-count purposes
    try:
        info = pltpu.get_tpu_info()
        cap = getattr(info, "vmem_capacity_bytes", None)
        if cap:
            vmem_cap = int(cap)
        for name in ("num_cores", "num_tensorcores", "tensorcore_count",
                     "cores_per_chip", "core_count"):
            c = getattr(info, name, None)
            if c:
                cores = int(c)
                break
    except Exception:
        pass                      # keep conservative defaults off-TPU / older jax
    vmem_limit = (vmem_cap * 3) // 4   # 48 MiB on v7x, 96 MiB on v5e/v6e
    return vmem_cap, max(1, cores), vmem_limit


def _choose_tile_rows(rows, feat, itemsize, vmem_cap, cores):
    """Byte-targeted row tile: ~2 MiB stored per tile, VMEM-ceiling aware,
    >=3 grid steps per core when that keeps tiles above the ~512 KiB floor."""
    gran = _sublane_gran(itemsize)
    eff_itemsize = max(itemsize, 4)            # f32 intermediates (xf, xf*xf)
    row_store = max(1, feat * itemsize)        # bytes/row as stored in HBM
    row_vmem = max(1, feat * eff_itemsize)     # bytes/row of widened temps

    # hard VMEM ceiling: double-buffered in+out (4 stored tiles) + ~2 tiles of
    # f32 temps must fit within half of physical VMEM (compiler headroom).
    vmem_budget = vmem_cap // 2
    t_vmem = vmem_budget // (4 * row_store + 2 * row_vmem)

    # bandwidth target
    t_bw = _TILE_TARGET_BYTES // row_store

    t = max(gran, min(t_vmem, t_bw))
    t = max(gran, _round_down(t, gran))

    if rows > t:
        # prefer >= ~3 steps per TensorCore for pipelining / megacore sharding,
        # but never shrink below the byte floor just to manufacture steps.
        min_steps = 3 * max(1, cores)
        t_steps = _round_up(pl.cdiv(rows, min_steps), gran)
        t_floor = max(gran, _round_down(_TILE_FLOOR_BYTES // row_store, gran))
        t = min(t, max(t_steps, t_floor))

    if t >= rows:
        t = rows                               # single full-extent block is legal
    return t


def _rows_tile_fits(feat, itemsize, vmem_cap):
    gran = _sublane_gran(itemsize)
    eff = max(itemsize, 4)
    need = gran * feat * (4 * itemsize + 2 * eff)
    return need <= vmem_cap // 2


def _l2norm_rows_kernel(x_ref, o_ref):
    # x_ref/o_ref: (tile_rows, D) tile in VMEM; each row normalized independently.
    xf = x_ref[...].astype(jnp.float32)
    sumsq = jnp.sum(xf * xf, axis=-1, keepdims=True)          # (tile_rows, 1)
    denom = jnp.sqrt(sumsq) + _EPS
    inv = pl.reciprocal(denom, approx=True)                   # EUP vrcp (free slot)
    inv = inv * (2.0 - denom * inv)                           # one Newton step -> ~f32 exact
    o_ref[...] = (xf * inv).astype(o_ref.dtype)               # scale in f32, cast once


def _l2norm_packed_kernel(x_ref, seg_ref, o_ref):
    # x_ref/o_ref: (tile_rows, 128) lane-dense slab holding k = 128//D rows each.
    # seg_ref: (128, 128) bf16 0/1 block-diagonal; (x*x) @ seg broadcasts each
    # D-segment's sum of squares to every lane of that segment.  bf16 operands +
    # f32 accumulation keep the (slack-filled) MXU off the critical path.
    xf = x_ref[...].astype(jnp.float32)
    sq = xf * xf
    sumsq = jnp.dot(sq.astype(jnp.bfloat16), seg_ref[...],
                    preferred_element_type=jnp.float32)
    denom = jnp.sqrt(sumsq) + _EPS
    inv = pl.reciprocal(denom, approx=True)
    inv = inv * (2.0 - denom * inv)
    o_ref[...] = (xf * inv).astype(o_ref.dtype)


def _l2norm_rows_call(x2d, vmem_cap, cores, vmem_limit, tile_rows=None):
    rows, feat = x2d.shape
    if tile_rows is None:
        tile_rows = _choose_tile_rows(rows, feat, x2d.dtype.itemsize, vmem_cap, cores)
    grid = (pl.cdiv(rows, tile_rows),)            # pad-free: partial last block
    return pl.pallas_call(
        _l2norm_rows_kernel,
        out_shape=jax.ShapeDtypeStruct((rows, feat), x2d.dtype),
        grid_spec=pltpu.PrefetchScalarGridSpec(
            num_scalar_prefetch=0,
            grid=grid,
            in_specs=[pl.BlockSpec((tile_rows, feat), lambda i: (i, 0))],
            out_specs=pl.BlockSpec((tile_rows, feat), lambda i: (i, 0)),
        ),
        compiler_params=pltpu.CompilerParams(
            dimension_semantics=("parallel",),
            vmem_limit_bytes=vmem_limit,
        ),
    )(x2d)


def _l2norm_packed_call(x2d, vmem_cap, cores, vmem_limit):
    rows, feat = x2d.shape
    k = _LANES // feat
    prows = rows // k
    xp = x2d.reshape(prows, _LANES)               # contiguous merge: pure view
    lane_seg = jnp.arange(_LANES) // feat
    seg = (lane_seg[:, None] == lane_seg[None, :]).astype(jnp.bfloat16)  # (128,128)
    tile_rows = _choose_tile_rows(prows, _LANES, x2d.dtype.itemsize, vmem_cap, cores)
    grid = (pl.cdiv(prows, tile_rows),)
    out = pl.pallas_call(
        _l2norm_packed_kernel,
        out_shape=jax.ShapeDtypeStruct((prows, _LANES), x2d.dtype),
        grid_spec=pltpu.PrefetchScalarGridSpec(
            num_scalar_prefetch=0,
            grid=grid,
            in_specs=[
                pl.BlockSpec((tile_rows, _LANES), lambda i: (i, 0)),
                pl.BlockSpec((_LANES, _LANES), lambda i: (0, 0)),   # resident seg
            ],
            out_specs=pl.BlockSpec((tile_rows, _LANES), lambda i: (i, 0)),
        ),
        compiler_params=pltpu.CompilerParams(
            dimension_semantics=("parallel",),
            vmem_limit_bytes=vmem_limit,
        ),
    )(xp, seg)
    return out.reshape(rows, feat)


def _l2norm_wide_call(x2d, vmem_cap, cores, vmem_limit, tile_rows=None, tile_d=None):
    """Two-pass path for feature dims too wide for a single-row-tile kernel:
    pass 1 accumulates per-row sum-of-squares across D chunks, pass 2 scales."""
    rows, feat = x2d.shape
    itemsize = x2d.dtype.itemsize
    gran = _sublane_gran(itemsize)
    eff = max(itemsize, 4)
    if tile_rows is None:
        tile_rows = gran
    if tile_d is None:
        per_elem = 4 * itemsize + 2 * eff         # dbl-buffered in+out + f32 temps
        td = (vmem_cap // 2) // max(1, tile_rows * per_elem)
        td = min(td, _TILE_TARGET_BYTES // max(1, tile_rows * itemsize))
        tile_d = max(_LANES, _round_down(td, _LANES))
    grid_r = pl.cdiv(rows, tile_rows)
    grid_d = pl.cdiv(feat, tile_d)

    def sumsq_kernel(x_ref, ss_ref):
        j = pl.program_id(1)

        @pl.when(j == 0)
        def _():
            ss_ref[...] = jnp.zeros_like(ss_ref)

        xf = x_ref[...].astype(jnp.float32)
        # mask columns past the true feature dim (partial last D block)
        col = j * tile_d + jax.lax.broadcasted_iota(jnp.int32, xf.shape, 1)
        xf = jnp.where(col < feat, xf, 0.0)
        ss_ref[...] += jnp.sum(xf * xf, axis=-1, keepdims=True)

    sumsq = pl.pallas_call(
        sumsq_kernel,
        out_shape=jax.ShapeDtypeStruct((rows, 1), jnp.float32),
        grid_spec=pltpu.PrefetchScalarGridSpec(
            num_scalar_prefetch=0,
            grid=(grid_r, grid_d),
            in_specs=[pl.BlockSpec((tile_rows, tile_d), lambda i, j: (i, j))],
            out_specs=pl.BlockSpec((tile_rows, 1), lambda i, j: (i, 0)),
        ),
        compiler_params=pltpu.CompilerParams(
            dimension_semantics=("parallel", "arbitrary"),
            vmem_limit_bytes=vmem_limit,
        ),
    )(x2d)

    def scale_kernel(x_ref, ss_ref, o_ref):
        xf = x_ref[...].astype(jnp.float32)
        denom = jnp.sqrt(ss_ref[...]) + _EPS
        inv = pl.reciprocal(denom, approx=True)
        inv = inv * (2.0 - denom * inv)
        o_ref[...] = (xf * inv).astype(o_ref.dtype)

    return pl.pallas_call(
        scale_kernel,
        out_shape=jax.ShapeDtypeStruct((rows, feat), x2d.dtype),
        grid_spec=pltpu.PrefetchScalarGridSpec(
            num_scalar_prefetch=0,
            grid=(grid_r, grid_d),
            in_specs=[pl.BlockSpec((tile_rows, tile_d), lambda i, j: (i, j)),
                      pl.BlockSpec((tile_rows, 1), lambda i, j: (i, 0))],
            out_specs=pl.BlockSpec((tile_rows, tile_d), lambda i, j: (i, j)),
        ),
        compiler_params=pltpu.CompilerParams(
            dimension_semantics=("parallel", "parallel"),
            vmem_limit_bytes=vmem_limit,
        ),
    )(x2d, sumsq)


def l2norm(x):
    """L2-normalize x along its last axis with Pallas TPU kernels."""
    orig_shape = x.shape
    d = orig_shape[-1]
    rows = 1
    for s in orig_shape[:-1]:
        rows *= s
    x2d = x.reshape(rows, d)
    vmem_cap, cores, vmem_limit = _tpu_budgets()

    if d < _LANES and _LANES % d == 0 and rows >= (_LANES // d):
        k = _LANES // d
        bulk = (rows // k) * k
        out_bulk = _l2norm_packed_call(x2d[:bulk], vmem_cap, cores, vmem_limit)
        if bulk == rows:
            out = out_bulk
        else:
            # Only the < k-row tail takes the lane-sparse (masked vst) path.
            out_tail = _l2norm_rows_call(x2d[bulk:], vmem_cap, cores, vmem_limit)
            # TODO(synk): stitch the tiny tail in place (input_output_aliases /
            # dynamic_update_slice) to avoid this concat copy of the bulk output.
            out = jnp.concatenate([out_bulk, out_tail], axis=0)
    elif not _rows_tile_fits(d, x2d.dtype.itemsize, vmem_cap):
        # very wide D: two-pass accumulate-then-scale (v7x 64 MiB VMEM safety)
        out = _l2norm_wide_call(x2d, vmem_cap, cores, vmem_limit)
    else:
        # TODO(synk): D < 128 that doesn't divide 128 stays lane-sparse; a packed
        # layout pass (gather/scatter) could lane-densify it too.
        out = _l2norm_rows_call(x2d, vmem_cap, cores, vmem_limit)
    return out.reshape(orig_shape)


class L2Module:
    """JAX/Pallas equivalent of the PyTorch L2Module (no parameters)."""

    def __call__(self, x):
        return l2norm(x)


if __name__ == "__main__":
    key = jax.random.PRNGKey(0)
    ks = jax.random.split(key, 5)
    mod = L2Module()
    vmem_cap, cores, vmem_limit = _tpu_budgets()

    def ref_l2(x):
        xf = x.astype(jnp.float32)
        return xf / (jnp.sqrt(jnp.sum(xf * xf, axis=-1, keepdims=True)) + _EPS)

    # 1) packed lane-dense path (D=32 < 128, rows divisible by k=4)
    x1 = jax.random.normal(ks[0], (2, 16, 32), dtype=jnp.float32)
    y1 = jax.block_until_ready(mod(x1))
    assert y1.shape == x1.shape and y1.dtype == x1.dtype
    assert float(jnp.max(jnp.abs(y1 - ref_l2(x1)))) < 5e-3   # bf16 segmented reduce

    # 2) packed bulk + tiny lane-sparse tail (rows=30, k=4 -> 28 packed + 2 tail)
    x2 = jax.random.normal(ks[1], (3, 10, 32), dtype=jnp.float32)
    y2 = jax.block_until_ready(mod(x2))
    assert y2.shape == x2.shape and y2.dtype == x2.dtype
    assert float(jnp.max(jnp.abs(y2 - ref_l2(x2)))) < 5e-3

    # 3) lane-dense rows path (D=256), both single-block dispatch and a forced
    #    multi-step grid with a pad-free partial last block (24 rows, 16-row tiles)
    x3 = jax.random.normal(ks[2], (3, 8, 256), dtype=jnp.float32)
    y3 = jax.block_until_ready(mod(x3))
    assert float(jnp.max(jnp.abs(y3 - ref_l2(x3)))) < 1e-4
    y3b = jax.block_until_ready(
        _l2norm_rows_call(x3.reshape(24, 256), vmem_cap, cores, vmem_limit,
                          tile_rows=16)).reshape(x3.shape)
    assert float(jnp.max(jnp.abs(y3b - ref_l2(x3)))) < 1e-4

    # 4) bf16 input (16-row sublane granularity path)
    x4 = jax.random.normal(ks[3], (4, 8, 256), dtype=jnp.bfloat16)
    y4 = jax.block_until_ready(mod(x4))
    assert y4.shape == x4.shape and y4.dtype == x4.dtype
    assert float(jnp.max(jnp.abs(y4.astype(jnp.float32) - ref_l2(x4)))) < 5e-3

    # 5) two-pass wide-D path (forced small tiles: grid (2, 3), partial D block)
    x5 = jax.random.normal(ks[4], (16, 320), dtype=jnp.float32)
    y5 = jax.block_until_ready(
        _l2norm_wide_call(x5, vmem_cap, cores, vmem_limit, tile_rows=8, tile_d=128))
    assert float(jnp.max(jnp.abs(y5 - ref_l2(x5)))) < 1e-4

    print("KERNEL_OK")
</pallas_src>

<mosaic_0001>
module attributes {stable_mosaic.version = 11 : i64} {
  func.func @_l2norm_packed_kernel(%arg0: i32, %arg1: memref<8x128xf32, #tpu.memory_space<vmem>>, %arg2: memref<128x128xbf16, #tpu.memory_space<vmem>>, %arg3: memref<8x128xf32, #tpu.memory_space<vmem>>) attributes {dimension_semantics = [#tpu.dimension_semantics<parallel>], iteration_bounds = array<i64: 1>, scalar_prefetch = 0 : i64, scratch_operands = 0 : i64, tpu.core_type = #tpu.core_type<tc>, window_params = [{transform_indices = @transform_0, window_bounds = array<i64: 8, 128>}, {pipeline_mode = #tpu.pipeline_mode<synchronous>, transform_indices = @transform_1, window_bounds = array<i64: 128, 128>}, {transform_indices = @transform_2, window_bounds = array<i64: 8, 128>}]} {
    %c0 = arith.constant 0 : index
    %c0_0 = arith.constant 0 : index
    %0 = vector.load %arg1[%c0, %c0_0] : memref<8x128xf32, #tpu.memory_space<vmem>>, vector<8x128xf32>
    %1 = arith.mulf %0, %0 : vector<8x128xf32>
    %2 = arith.truncf %1 : vector<8x128xf32> to vector<8x128xbf16>
    %c0_1 = arith.constant 0 : index
    %c0_2 = arith.constant 0 : index
    %3 = vector.load %arg2[%c0_1, %c0_2] : memref<128x128xbf16, #tpu.memory_space<vmem>>, vector<128x128xbf16>
    %cst = arith.constant dense<0.000000e+00> : vector<8x128xf32>
    %4 = tpu.matmul %2, %3, %cst {dimension_numbers = #tpu.dot_dimension_numbers<[1], [0], [0], [1], [0, 0, 1, 1], [], []>} : vector<8x128xbf16>, vector<128x128xbf16>, vector<8x128xf32> -> vector<8x128xf32>
    %5 = math.sqrt %4 : vector<8x128xf32>
    %cst_3 = arith.constant 9.99999993E-9 : f32
    %6 = vector.broadcast %cst_3 : f32 to vector<8x128xf32>
    %7 = arith.addf %5, %6 : vector<8x128xf32>
    %8 = tpu.reciprocal %7 {approx = true} : vector<8x128xf32> -> vector<8x128xf32>
    %9 = arith.mulf %7, %8 : vector<8x128xf32>
    %cst_4 = arith.constant 2.000000e+00 : f32
    %10 = vector.broadcast %cst_4 : f32 to vector<8x128xf32>
    %11 = arith.subf %10, %9 : vector<8x128xf32>
    %12 = arith.mulf %8, %11 : vector<8x128xf32>
    %13 = arith.mulf %0, %12 : vector<8x128xf32>
    %c0_5 = arith.constant 0 : index
    %c0_6 = arith.constant 0 : index
    %14 = vector.load %arg3[%c0_5, %c0_6] : memref<8x128xf32, #tpu.memory_space<vmem>>, vector<8x128xf32>
    tpu.vector_store %arg3[%c0_5, %c0_6], %13 {strides = array<i32>} : memref<8x128xf32, #tpu.memory_space<vmem>>, vector<8x128xf32>,
    return
  }
  func.func @transform_0(%arg0: i32) -> (i32, i32) {
    %c0_i32 = arith.constant 0 : i32
    %c0_i32_0 = arith.constant 0 : i32
    return %arg0, %c0_i32 : i32, i32
  }
  func.func @transform_1(%arg0: i32) -> (i32, i32) {
    %c0_i32 = arith.constant 0 : i32
    %c0_i32_0 = arith.constant 0 : i32
    %c0_i32_1 = arith.constant 0 : i32
    return %c0_i32, %c0_i32_0 : i32, i32
  }
  func.func @transform_2(%arg0: i32) -> (i32, i32) {
    %c0_i32 = arith.constant 0 : i32
    %c0_i32_0 = arith.constant 0 : i32
    return %arg0, %c0_i32 : i32, i32
  }
}

</mosaic_0001>

<bundles_post_ra>
// kernel: tpu_custom_call.1
= control target key start
LH: loop header
LB: loop body
LE: loop exit
PB: predicated region body
PF: predicated region fallthrough
CT: control target
= control target key end

     0   :  { %7 = vsyncpa [#allocation3], 0  ;;  %s369_s0 = inlined_call_operand.hbm [shape: f32[8,128], index: 0, kind: input, shape index: {}]   ;;  %s370_s1 = inlined_call_operand.hbm [shape: bf16[128,128], index: 1, kind: input, shape index: {}]   ;;  %s371_s2 = inlined_call_operand.hbm [shape: f32[8,128], index: 2, kind: output, shape index: {}]  }
   0x1   :  { %8 = vsyncpa [#allocation6], 0 }
   0x2   :  { %9 = vsyncpa [#allocation4], 0  ;;  %s304_s9 = smov [#allocation2]   ;;  %s305_s11 = smov [#allocation5]  }
   0x3   :  { %s16_s10 = sshll.u32 %s304_s9, 4  ;;  %s25_s12 = sshll.u32 %s305_s11, 4  ;;  %s17_s10 = int_to_ptr.vmem [resolvable:$true] %s16_s10  ;;  %s326_s12 = int_to_ptr.vmem [resolvable:$true] %s25_s12 }
   0x4   :  { %s232_s15 = scalar_lea.hbm %s369_s0, 128 }
   0x5   :  { %p233_p0 = scmp.ne.s32.totalorder %s369_s0, %s232_s15  ;;  %p236_p1 = scmp.lt.u32.totalorder %s232_s15, %s369_s0 }
   0x7   :  { %p238_p2 = pnand %p236_p1, %p233_p0 }
   0x9   :  { %241 = shalt.err (!%p238_p2)
}
   0xa   :  { %s242_s20 = scalar_lea.vmem %s17_s10, 128  ;;  %p247_p4 = scmp.lt.s32.totalorder %s17_s10, %s17_s10 }
   0xb   :  { %p243_p3 = scmp.ne.s32.totalorder %s17_s10, %s242_s20  ;;  %p248_p5 = scmp.lt.s32.totalorder %s242_s20, %s242_s20 }
   0xd   :  { %p249_p6 = por %p248_p5, %p247_p4 }
   0xf   :  { %p250_p7 = pnand %p249_p6, %p243_p3 }
  0x11   :  { %253 = shalt.err (!%p250_p7)
}
  0x12   :  { %19 = dma.hbm_to_vmem [thread:$0]  %s369_s0, 128, %s17_s10, [#allocation3]  }
  0x13   :  { %s254_s25 = scalar_lea.hbm %s370_s1, 1024 }
  0x14   :  { %p255_p8 = scmp.ne.s32.totalorder %s370_s1, %s254_s25  ;;  %p258_p9 = scmp.lt.u32.totalorder %s254_s25, %s370_s1 }
  0x16   :  { %p260_p10 = pnand %p258_p9, %p255_p8 }
  0x18   :  { %263 = shalt.err (!%p260_p10)
}
  0x19   :  { %s264_s30 = scalar_lea.vmem %s326_s12, 1024  ;;  %p269_p12 = scmp.lt.s32.totalorder %s326_s12, %s326_s12 }
  0x1a   :  { %p265_p11 = scmp.ne.s32.totalorder %s326_s12, %s264_s30  ;;  %p270_p13 = scmp.lt.s32.totalorder %s264_s30, %s264_s30 }
  0x1c   :  { %p271_p0 = por %p270_p13, %p269_p12 }
  0x1e   :  { %p272_p1 = pnand %p271_p0, %p265_p11 }
  0x20   :  { %275 = shalt.err (!%p272_p1)
}
  0x21   :  { %s306_s0 = smov 64   ;;  %s307_s3 = smov 4  }
  0x22   :  { %31 = dma.hbm_to_vmem [thread:$0]  %s370_s1, 1024, %s326_s12, [#allocation6], %s306_s0, %s306_s0, %s307_s3  }
  0x23   :  { %298 = dma.done.wait [#allocation3], 128  }
  0x24   :  { %299 = vsyncadd [#allocation3], 4294967168 }
  0x25   :  { %300 = dma.done.wait [#allocation6], 1024  }
  0x26   :  { %301 = vsyncadd [#allocation6], 4294966272  ;;  %v308_v0 = vmov 0.0   ;;  %vm309_vm0 = vmmov 0   ;;  %v220_v1 = vld [vmem:[#allocation5] sm:$0xff]   ;;  %v221_v2 = vld [vmem:[#allocation5 + $0x8] sm:$0xff]  }
  0x27   :  { %193 = vmatprep.subr.bf16.mxu0 %v308_v0  ;;  %209 = vmatprep.mubr.msk.bf16.mxu0 %vm309_vm0, %v308_v0  ;;  %v222_v3 = vld [vmem:[#allocation5 + $0x10] sm:$0xff]   ;;  %v223_v4 = vld [vmem:[#allocation5 + $0x18] sm:$0xff]   ;;  %v224_v5 = vld [vmem:[#allocation5 + $0x20] sm:$0xff]   ;;  %s310_s1 = smov [#allocation7]  }
  0x28   :  { %194 = vmatpush3.bf16.msra.mxu0 %v220_v1  ;;  %v225_v6 = vld [vmem:[#allocation5 + $0x28] sm:$0xff]   ;;  %v226_v7 = vld [vmem:[#allocation5 + $0x30] sm:$0xff]   ;;  %v39_v8 = vld [vmem:[#allocation2] sm:$0xff]  ;;  %s166_s6 = sshll.u32 %s310_s1, 4  ;;  %s167_s6 = int_to_ptr.vmem [resolvable:$true] %s166_s6 }
  0x29   :  { %195 = vmatprep.subr.bf16.mxu0 %v308_v0  ;;  %v40_v9 = vmul.f32 %v39_v8, %v39_v8  ;;  %v227_v10 = vld [vmem:[#allocation5 + $0x38] sm:$0xff]   ;;  %s276_s7 = scalar_lea.vmem %s167_s6, 128  ;;  %p281_p3 = scmp.lt.s32.totalorder %s167_s6, %s167_s6 }
  0x2a   :  { %p277_p2 = scmp.ne.s32.totalorder %s167_s6, %s276_s7  ;;  %p282_p4 = scmp.lt.s32.totalorder %s276_s7, %s276_s7 }
  0x2b   :  { %v41_v11 = vpack.c.bf16 %v40_v9, %v40_v9 }
  0x2c   :  { %196 = vmatpush3.bf16.msra.mxu0 %v221_v2  ;;  %p283_p5 = por %p282_p4, %p281_p3 }
  0x2d   :  { %197 = vmatprep.subr.bf16.mxu0 %v308_v0 }
  0x2e   :  { %p284_p6 = pnand %p283_p5, %p277_p2 }
  0x30   :  { %198 = vmatpush3.bf16.msra.mxu0 %v222_v3 }
  0x31   :  { %199 = vmatprep.subr.bf16.mxu0 %v308_v0 }
  0x34   :  { %200 = vmatpush3.bf16.msra.mxu0 %v223_v4 }
  0x35   :  { %201 = vmatprep.subr.bf16.mxu0 %v308_v0 }
  0x38   :  { %202 = vmatpush3.bf16.msra.mxu0 %v224_v5 }
  0x39   :  { %203 = vmatprep.subr.bf16.mxu0 %v308_v0 }
  0x3c   :  { %204 = vmatpush3.bf16.msra.mxu0 %v225_v6 }
  0x3d   :  { %205 = vmatprep.subr.bf16.mxu0 %v308_v0 }
  0x40   :  { %206 = vmatpush3.bf16.msra.mxu0 %v226_v7 }
  0x41   :  { %207 = vmatprep.subr.bf16.mxu0 %v308_v0 }
  0x44   :  { %208 = vmatpush3.bf16.msra.mxu0 %v227_v10 }
  0x47   :  { %210 = vmatmul.mubr.bf16.vlgmr.msra.gmra.mrb[0].mxu0 %v41_v11 }
 0x11a   :  { %v140_v12 = vpop.f32.mrb[0].mxu0 }
 0x11b   :  { %228 = vrsqrt.f32 %v140_v12  ;;  %v211_v13 = vpop.f32.mrb[1].mxu0  ;;  %vm148_vm1 = vcmp.eq.f32.partialorder %v140_v12, inf  ;;  %v151_v18 = vand.u32 2147483648, %v140_v12  ;;  %vm150_vm2 = vcmp.eq.f32.partialorder %v140_v12, 0.0 }
 0x11c   :  { %v143_v14 = vpop.f32.mrb[2].mxu0 }
 0x11d   :  { %v212_v15 = vpop.f32.mrb[3].mxu0 }
 0x125   :  { %v229_v16 = vpop.eup %228 }
 0x126   :  { %v147_v17 = vmul.f32 %v229_v16, %v140_v12 }
 0x128   :  { %v149_v19 = vsel %vm148_vm1, %v140_v12, %v147_v17 }
 0x129   :  { %v152_v20 = vsel %vm150_vm2, %v151_v18, %v149_v19 }
 0x12a   :  { %v153_v21 = vadd.f32 1e-08, %v152_v20 }
 0x12c   :  { %230 = vrcp.f32 %v153_v21 }
 0x136   :  { %v231_v22 = vpop.eup %230 }
 0x137   :  { %v155_v23 = vmul.f32 %v231_v22, %v153_v21 }
 0x139   :  { %v156_v24 = vsub.f32 2.0, %v155_v23 }
 0x13b   :  { %v157_v25 = vmul.f32 %v231_v22, %v156_v24 }
 0x13d   :  { %v158_v26 = vmul.f32 %v157_v25, %v39_v8 }
 0x13f   :  { %159 = vst [vmem:[#allocation7] sm:$0xff] %v158_v26 }
 0x140   :  { %287 = shalt.err (!%p284_p6)
}
 0x141   :  { %s288_s10 = scalar_lea.hbm %s371_s2, 128 }
 0x142   :  { %p289_p7 = scmp.ne.s32.totalorder %s371_s2, %s288_s10  ;;  %p292_p8 = scmp.lt.u32.totalorder %s288_s10, %s371_s2 }
 0x144   :  { %p294_p9 = pnand %p292_p8, %p289_p7 }
 0x146   :  { %297 = shalt.err (!%p294_p9)
}
 0x147   :  { %169 = dma.vmem_to_hbm [thread:$0]  %s167_s6, 128, %s371_s2, [#allocation4]  }
 0x148   :  { %302 = dma.done.wait [#allocation4], 128  }
 0x149   :  { %303 = vsyncadd [#allocation4], 4294967168 }
 0x14a   :  { %173 = vsyncpa [#allocation3], 1 }
 0x14b   :  { %174 = vsyncpa [#allocation6], 1 }
 0x14c   :  { %175 = vsyncpa [#allocation4], 1 }

</bundles_post_ra>
